<compile_context>
chip_gen: v5e
topology: v5e:2x2
jax: 0.10.0
libtpu: 0.0.40
codegen_flags: <defaults>
</compile_context>

<pallas_src>
import jax
import jax.numpy as jnp
from jax.experimental import pallas as pl
from jax.experimental.pallas import tpu as pltpu

HID1, HID2, HID3 = 128, 64, 32


def _round_up(n, m):
    return ((n + m - 1) // m) * m


def _cdiv(a, b):
    return (a + b - 1) // b


def dqn_kernel(x_ref,
               w1_ref, b1_ref,
               w2_ref, b2_ref,
               w3_ref, b3_ref,
               w4_ref, b4_ref,
               o_ref):
    """relu(relu(relu(x@W1+b1)@W2+b2)@W3+b3)@W4+b4 for one batch tile.

    x_ref: (b_tile, S) f32. Weights: bf16, natural (unpadded) shapes. Biases:
    f32 (1, out). MXU ops in bf16 with f32 accumulation; elementwise in f32.
    """
    # fc1 + relu (cast x to bf16 in-kernel; no separate host cast pass)
    h = jnp.dot(x_ref[...].astype(jnp.bfloat16), w1_ref[...],
                preferred_element_type=jnp.float32)
    h = jnp.maximum(h + b1_ref[...], 0.0)
    # fc2 + relu
    h = jnp.dot(h.astype(jnp.bfloat16), w2_ref[...],
                preferred_element_type=jnp.float32)
    h = jnp.maximum(h + b2_ref[...], 0.0)
    # fc3 + relu
    h = jnp.dot(h.astype(jnp.bfloat16), w3_ref[...],
                preferred_element_type=jnp.float32)
    h = jnp.maximum(h + b3_ref[...], 0.0)
    # fc4 (no activation); narrow (action_size-wide) output block
    h = jnp.dot(h.astype(jnp.bfloat16), w4_ref[...],
                preferred_element_type=jnp.float32)
    o_ref[...] = (h + b4_ref[...]).astype(o_ref.dtype)


def _choose_batch_tile(B, target_rows=1024):
    """Batch tile that (a) minimizes batch padding, (b) is a multiple of 8
    (f32 sublane), and (c) gives >= 2 grid steps when B >= 32 so the 'parallel'
    batch axis can be sharded across both v7x TensorCores."""
    n_steps = max(1, _cdiv(B, target_rows))
    if B >= 32 and n_steps < 2:
        n_steps = 2
    return _round_up(_cdiv(B, n_steps), 8)


def dqn_forward(x, params, *, target_rows=1024):
    """x: (B, state_size) f32. params: bf16 weights (in,out) natural shapes,
    f32 biases (1,out). Returns (B, action_size) f32 Q-values."""
    B, S = x.shape
    action_size = params["w4"].shape[1]

    b_tile = _choose_batch_tile(B, target_rows)
    B_pad = _round_up(B, b_tile)
    # Batch-only zero padding; skipped entirely when B already divides evenly.
    xp = x if B_pad == B else jnp.pad(x, ((0, B_pad - B), (0, 0)))

    def full_spec(arr):
        # Whole (tiny) array as one block, same every step -> stays VMEM-resident.
        return pl.BlockSpec(arr.shape, lambda i: (0, 0))

    out = pl.pallas_call(
        dqn_kernel,
        out_shape=jax.ShapeDtypeStruct((B_pad, action_size), jnp.float32),
        grid=(B_pad // b_tile,),
        in_specs=[
            # x: full-extent (unpadded) feature dim, tiled over batch only.
            pl.BlockSpec((b_tile, S), lambda i: (i, 0)),
            full_spec(params["w1"]), full_spec(params["b1"]),
            full_spec(params["w2"]), full_spec(params["b2"]),
            full_spec(params["w3"]), full_spec(params["b3"]),
            full_spec(params["w4"]), full_spec(params["b4"]),
        ],
        # Narrow output: last dim == full array dim (legal), no lane padding.
        out_specs=pl.BlockSpec((b_tile, action_size), lambda i: (i, 0)),
        compiler_params=pltpu.CompilerParams(
            dimension_semantics=("parallel",),   # megacore batch sharding (v7x)
            vmem_limit_bytes=32 * 1024 * 1024,   # way above actual use; safe everywhere
        ),
    )(xp,
      params["w1"], params["b1"],
      params["w2"], params["b2"],
      params["w3"], params["b3"],
      params["w4"], params["b4"])

    return out[:B]


def init_params(key, state_size, action_size):
    """Deterministic init mimicking nn.Linear default (uniform +-1/sqrt(fan_in)).
    Logical f32 params; weights stored already-transposed as (in, out)."""
    dims = [(state_size, HID1), (HID1, HID2), (HID2, HID3), (HID3, action_size)]
    params = {}
    for i, (fan_in, fan_out) in enumerate(dims, start=1):
        key, kw, kb = jax.random.split(key, 3)
        bound = 1.0 / jnp.sqrt(float(fan_in))
        params[f"w{i}"] = jax.random.uniform(
            kw, (fan_in, fan_out), jnp.float32, minval=-bound, maxval=bound)
        params[f"b{i}"] = jax.random.uniform(
            kb, (1, fan_out), jnp.float32, minval=-bound, maxval=bound)
    return params


def kernel_params(params):
    """Kernel-side params: natural (unpadded) shapes; weights -> bf16 MXU
    operands, biases stay f32."""
    kp = {}
    for i in range(1, 5):
        kp[f"w{i}"] = params[f"w{i}"].astype(jnp.bfloat16)
        kp[f"b{i}"] = params[f"b{i}"]
    return kp


def reference_forward_f32(x, params):
    h = jnp.maximum(x @ params["w1"] + params["b1"], 0.0)
    h = jnp.maximum(h @ params["w2"] + params["b2"], 0.0)
    h = jnp.maximum(h @ params["w3"] + params["b3"], 0.0)
    return h @ params["w4"] + params["b4"]


def reference_forward_bf16(x, params):
    """Mirrors the kernel's dtype path (bf16 matmul operands, f32 accumulate)."""
    bf = jnp.bfloat16
    h = x.astype(bf)
    for i in range(1, 4):
        h = jnp.dot(h, params[f"w{i}"].astype(bf),
                    preferred_element_type=jnp.float32) + params[f"b{i}"]
        h = jnp.maximum(h, 0.0).astype(bf)
    return jnp.dot(h, params["w4"].astype(bf),
                   preferred_element_type=jnp.float32) + params["b4"]


if __name__ == "__main__":
    key = jax.random.PRNGKey(0)
    batch, state_size, action_size = 2, 8, 4

    key, kx = jax.random.split(key)
    x = jax.random.normal(kx, (batch, state_size), jnp.float32)
    params = init_params(key, state_size, action_size)
    kparams = kernel_params(params)

    out = dqn_forward(x, kparams)
    out = jax.block_until_ready(out)
    assert out.shape == (batch, action_size), out.shape

    # Exact dtype-matched check (bf16 operands, f32 accumulation).
    ref_bf16 = reference_forward_bf16(x, params)
    assert jnp.allclose(out, ref_bf16, atol=1e-3, rtol=1e-3), \
        "mismatch vs. bf16-matched reference"

    # Loose sanity check vs. the pure-f32 PyTorch-equivalent forward
    # (bf16 matmul operands are an intentional precision trade-off).
    ref_f32 = reference_forward_f32(x, params)
    assert jnp.allclose(out, ref_f32, atol=1e-1, rtol=1e-1), \
        "mismatch vs. f32 reference"

    print("KERNEL_OK")
</pallas_src>

<mosaic_0001>
module attributes {stable_mosaic.version = 11 : i64} {
  func.func @dqn_kernel(%arg0: i32, %arg1: memref<8x8xf32, #tpu.memory_space<vmem>>, %arg2: memref<8x128xbf16, #tpu.memory_space<vmem>>, %arg3: memref<1x128xf32, #tpu.memory_space<vmem>>, %arg4: memref<128x64xbf16, #tpu.memory_space<vmem>>, %arg5: memref<1x64xf32, #tpu.memory_space<vmem>>, %arg6: memref<64x32xbf16, #tpu.memory_space<vmem>>, %arg7: memref<1x32xf32, #tpu.memory_space<vmem>>, %arg8: memref<32x4xbf16, #tpu.memory_space<vmem>>, %arg9: memref<1x4xf32, #tpu.memory_space<vmem>>, %arg10: memref<8x4xf32, #tpu.memory_space<vmem>>) attributes {dimension_semantics = [#tpu.dimension_semantics<parallel>], iteration_bounds = array<i64: 1>, scalar_prefetch = 0 : i64, scratch_operands = 0 : i64, tpu.core_type = #tpu.core_type<tc>, window_params = [{transform_indices = @transform_0, window_bounds = array<i64: 8, 8>}, {pipeline_mode = #tpu.pipeline_mode<synchronous>, transform_indices = @transform_1, window_bounds = array<i64: 8, 128>}, {pipeline_mode = #tpu.pipeline_mode<synchronous>, transform_indices = @transform_2, window_bounds = array<i64: 1, 128>}, {pipeline_mode = #tpu.pipeline_mode<synchronous>, transform_indices = @transform_3, window_bounds = array<i64: 128, 64>}, {pipeline_mode = #tpu.pipeline_mode<synchronous>, transform_indices = @transform_4, window_bounds = array<i64: 1, 64>}, {pipeline_mode = #tpu.pipeline_mode<synchronous>, transform_indices = @transform_5, window_bounds = array<i64: 64, 32>}, {pipeline_mode = #tpu.pipeline_mode<synchronous>, transform_indices = @transform_6, window_bounds = array<i64: 1, 32>}, {pipeline_mode = #tpu.pipeline_mode<synchronous>, transform_indices = @transform_7, window_bounds = array<i64: 32, 4>}, {pipeline_mode = #tpu.pipeline_mode<synchronous>, transform_indices = @transform_8, window_bounds = array<i64: 1, 4>}, {transform_indices = @transform_9, window_bounds = array<i64: 8, 4>}]} {
    %c0 = arith.constant 0 : index
    %c0_0 = arith.constant 0 : index
    %0 = vector.load %arg1[%c0, %c0_0] : memref<8x8xf32, #tpu.memory_space<vmem>>, vector<8x8xf32>
    %1 = arith.truncf %0 : vector<8x8xf32> to vector<8x8xbf16>
    %c0_1 = arith.constant 0 : index
    %c0_2 = arith.constant 0 : index
    %2 = vector.load %arg2[%c0_1, %c0_2] : memref<8x128xbf16, #tpu.memory_space<vmem>>, vector<8x128xbf16>
    %cst = arith.constant dense<0.000000e+00> : vector<8x128xf32>
    %3 = tpu.matmul %1, %2, %cst {dimension_numbers = #tpu.dot_dimension_numbers<[1], [0], [0], [1], [0, 0, 1, 1], [], []>} : vector<8x8xbf16>, vector<8x128xbf16>, vector<8x128xf32> -> vector<8x128xf32>
    %c0_3 = arith.constant 0 : index
    %c0_4 = arith.constant 0 : index
    %4 = vector.load %arg3[%c0_3, %c0_4] : memref<1x128xf32, #tpu.memory_space<vmem>>, vector<1x128xf32>
    %5 = vector.broadcast %4 : vector<1x128xf32> to vector<8x128xf32>
    %6 = arith.addf %3, %5 : vector<8x128xf32>
    %cst_5 = arith.constant 0.000000e+00 : f32
    %7 = vector.broadcast %cst_5 : f32 to vector<8x128xf32>
    %8 = arith.maximumf %6, %7 : vector<8x128xf32>
    %9 = arith.truncf %8 : vector<8x128xf32> to vector<8x128xbf16>
    %c0_6 = arith.constant 0 : index
    %c0_7 = arith.constant 0 : index
    %10 = vector.load %arg4[%c0_6, %c0_7] : memref<128x64xbf16, #tpu.memory_space<vmem>>, vector<128x64xbf16>
    %cst_8 = arith.constant dense<0.000000e+00> : vector<8x64xf32>
    %11 = tpu.matmul %9, %10, %cst_8 {dimension_numbers = #tpu.dot_dimension_numbers<[1], [0], [0], [1], [0, 0, 1, 1], [], []>} : vector<8x128xbf16>, vector<128x64xbf16>, vector<8x64xf32> -> vector<8x64xf32>
    %c0_9 = arith.constant 0 : index
    %c0_10 = arith.constant 0 : index
    %12 = vector.load %arg5[%c0_9, %c0_10] : memref<1x64xf32, #tpu.memory_space<vmem>>, vector<1x64xf32>
    %13 = vector.broadcast %12 : vector<1x64xf32> to vector<8x64xf32>
    %14 = arith.addf %11, %13 : vector<8x64xf32>
    %cst_11 = arith.constant 0.000000e+00 : f32
    %15 = vector.broadcast %cst_11 : f32 to vector<8x64xf32>
    %16 = arith.maximumf %14, %15 : vector<8x64xf32>
    %17 = arith.truncf %16 : vector<8x64xf32> to vector<8x64xbf16>
    %c0_12 = arith.constant 0 : index
    %c0_13 = arith.constant 0 : index
    %18 = vector.load %arg6[%c0_12, %c0_13] : memref<64x32xbf16, #tpu.memory_space<vmem>>, vector<64x32xbf16>
    %cst_14 = arith.constant dense<0.000000e+00> : vector<8x32xf32>
    %19 = tpu.matmul %17, %18, %cst_14 {dimension_numbers = #tpu.dot_dimension_numbers<[1], [0], [0], [1], [0, 0, 1, 1], [], []>} : vector<8x64xbf16>, vector<64x32xbf16>, vector<8x32xf32> -> vector<8x32xf32>
    %c0_15 = arith.constant 0 : index
    %c0_16 = arith.constant 0 : index
    %20 = vector.load %arg7[%c0_15, %c0_16] : memref<1x32xf32, #tpu.memory_space<vmem>>, vector<1x32xf32>
    %21 = vector.broadcast %20 : vector<1x32xf32> to vector<8x32xf32>
    %22 = arith.addf %19, %21 : vector<8x32xf32>
    %cst_17 = arith.constant 0.000000e+00 : f32
    %23 = vector.broadcast %cst_17 : f32 to vector<8x32xf32>
    %24 = arith.maximumf %22, %23 : vector<8x32xf32>
    %25 = arith.truncf %24 : vector<8x32xf32> to vector<8x32xbf16>
    %c0_18 = arith.constant 0 : index
    %c0_19 = arith.constant 0 : index
    %26 = vector.load %arg8[%c0_18, %c0_19] : memref<32x4xbf16, #tpu.memory_space<vmem>>, vector<32x4xbf16>
    %cst_20 = arith.constant dense<0.000000e+00> : vector<8x4xf32>
    %27 = tpu.matmul %25, %26, %cst_20 {dimension_numbers = #tpu.dot_dimension_numbers<[1], [0], [0], [1], [0, 0, 1, 1], [], []>} : vector<8x32xbf16>, vector<32x4xbf16>, vector<8x4xf32> -> vector<8x4xf32>
    %c0_21 = arith.constant 0 : index
    %c0_22 = arith.constant 0 : index
    %28 = vector.load %arg9[%c0_21, %c0_22] : memref<1x4xf32, #tpu.memory_space<vmem>>, vector<1x4xf32>
    %29 = vector.broadcast %28 : vector<1x4xf32> to vector<8x4xf32>
    %30 = arith.addf %27, %29 : vector<8x4xf32>
    %c0_23 = arith.constant 0 : index
    %c0_24 = arith.constant 0 : index
    %31 = vector.load %arg10[%c0_23, %c0_24] : memref<8x4xf32, #tpu.memory_space<vmem>>, vector<8x4xf32>
    tpu.vector_store %arg10[%c0_23, %c0_24], %30 {strides = array<i32>} : memref<8x4xf32, #tpu.memory_space<vmem>>, vector<8x4xf32>,
    return
  }
  func.func @transform_0(%arg0: i32) -> (i32, i32) {
    %c0_i32 = arith.constant 0 : i32
    %c0_i32_0 = arith.constant 0 : i32
    return %arg0, %c0_i32 : i32, i32
  }
  func.func @transform_1(%arg0: i32) -> (i32, i32) {
    %c0_i32 = arith.constant 0 : i32
    %c0_i32_0 = arith.constant 0 : i32
    %c0_i32_1 = arith.constant 0 : i32
    return %c0_i32, %c0_i32_0 : i32, i32
  }
  func.func @transform_2(%arg0: i32) -> (i32, i32) {
    %c0_i32 = arith.constant 0 : i32
    %c0_i32_0 = arith.constant 0 : i32
    %c0_i32_1 = arith.constant 0 : i32
    return %c0_i32, %c0_i32_0 : i32, i32
  }
  func.func @transform_3(%arg0: i32) -> (i32, i32) {
    %c0_i32 = arith.constant 0 : i32
    %c0_i32_0 = arith.constant 0 : i32
    %c0_i32_1 = arith.constant 0 : i32
    return %c0_i32, %c0_i32_0 : i32, i32
  }
  func.func @transform_4(%arg0: i32) -> (i32, i32) {
    %c0_i32 = arith.constant 0 : i32
    %c0_i32_0 = arith.constant 0 : i32
    %c0_i32_1 = arith.constant 0 : i32
    return %c0_i32, %c0_i32_0 : i32, i32
  }
  func.func @transform_5(%arg0: i32) -> (i32, i32) {
    %c0_i32 = arith.constant 0 : i32
    %c0_i32_0 = arith.constant 0 : i32
    %c0_i32_1 = arith.constant 0 : i32
    return %c0_i32, %c0_i32_0 : i32, i32
  }
  func.func @transform_6(%arg0: i32) -> (i32, i32) {
    %c0_i32 = arith.constant 0 : i32
    %c0_i32_0 = arith.constant 0 : i32
    %c0_i32_1 = arith.constant 0 : i32
    return %c0_i32, %c0_i32_0 : i32, i32
  }
  func.func @transform_7(%arg0: i32) -> (i32, i32) {
    %c0_i32 = arith.constant 0 : i32
    %c0_i32_0 = arith.constant 0 : i32
    %c0_i32_1 = arith.constant 0 : i32
    return %c0_i32, %c0_i32_0 : i32, i32
  }
  func.func @transform_8(%arg0: i32) -> (i32, i32) {
    %c0_i32 = arith.constant 0 : i32
    %c0_i32_0 = arith.constant 0 : i32
    %c0_i32_1 = arith.constant 0 : i32
    return %c0_i32, %c0_i32_0 : i32, i32
  }
  func.func @transform_9(%arg0: i32) -> (i32, i32) {
    %c0_i32 = arith.constant 0 : i32
    %c0_i32_0 = arith.constant 0 : i32
    return %arg0, %c0_i32 : i32, i32
  }
}

</mosaic_0001>

<bundles_post_ra>
// kernel: tpu_custom_call.1
= control target key start
LH: loop header
LB: loop body
LE: loop exit
PB: predicated region body
PF: predicated region fallthrough
CT: control target
= control target key end

     0   :  { %vm44_vm0 = vcmask 1043456   ;;  %vm40_vm1 = vcmask 64512   ;;  %vm182_vm2 = vcmask 523264   ;;  %vm221_vm3 = vcmask 261120   ;;  %s434_s1 = inlined_call_operand.vmem [shape: bf16[8,128], index: 1, kind: input, shape index: {}]   ;;  %s435_s0 = inlined_call_operand.vmem [shape: f32[8,8], index: 0, kind: input, shape index: {}]   ;;  %s436_s3 = inlined_call_operand.vmem [shape: bf16[128,64], index: 3, kind: input, shape index: {}]   ;;  %s437_s2 = inlined_call_operand.vmem [shape: f32[1,128], index: 2, kind: input, shape index: {}]   ;;  %s438_s4 = inlined_call_operand.vmem [shape: f32[1,64], index: 4, kind: input, shape index: {}]   ;;  %s439_s5 = inlined_call_operand.vmem [shape: bf16[64,32], index: 5, kind: input, shape index: {}]   ;;  %s440_s6 = inlined_call_operand.vmem [shape: f32[1,32], index: 6, kind: input, shape index: {}]   ;;  %s441_s8 = inlined_call_operand.vmem [shape: f32[1,4], index: 8, kind: input, shape index: {}]   ;;  %s442_s7 = inlined_call_operand.vmem [shape: bf16[32,4], index: 7, kind: input, shape index: {}]   ;;  %s443_s9 = inlined_call_operand.vmem [shape: f32[8,4], index: 9, kind: output, shape index: {}]  }
   0x1   :  { %v35_v0 = vld [vmem:[%s434_s1] sm:$0xf]  ;;  %v310_v2 = vld [vmem:[%s436_s3 + $0x38] sm:$0xff]  ;;  %v309_v5 = vld [vmem:[%s436_s3 + $0x30] sm:$0xff]  ;;  %vm238_vm4 = vcmask 31744  }
   0x2   :  { %v33_v1 = vld [vmem:[%s435_s0] sm:$0xff]  ;;  %v46_v3 = vsel %vm44_vm0, %v35_v0, 0  ;;  %131 = vmatpush.bf16.msra.mxu1 %v310_v2  ;;  %v308_v6 = vld [vmem:[%s436_s3 + $0x28] sm:$0xff]  ;;  %v306_v8 = vld [vmem:[%s436_s3 + $0x18] sm:$0xff] }
   0x3   :  { %v34_v4 = vpack.c.bf16 %v33_v1, %v33_v1  ;;  %55 = vmatpush.bf16.msra.mxu0 %v46_v3  ;;  %v307_v7 = vld [vmem:[%s436_s3 + $0x20] sm:$0xff]  ;;  %v305_v9 = vld [vmem:[%s436_s3 + $0x10] sm:$0xff]  ;;  %v304_v10 = vld [vmem:[%s436_s3 + $0x8] sm:$0xff] }
   0x4   :  { %v303_v11 = vld [vmem:[%s436_s3] sm:$0xff]  ;;  %v314_v12 = vld [vmem:[%s439_s5 + $0x18] sm:$0xff]  ;;  %v313_v13 = vld [vmem:[%s439_s5 + $0x10] sm:$0xff] }
   0x5   :  { %190 = vmatpush.bf16.msra.mxu2 %v314_v12  ;;  %v317_v14 = vld [vmem:[%s437_s2] ss:$0 sm:$0xff]  ;;  %v312_v20 = vld [vmem:[%s439_s5 + $0x8] sm:$0xff] }
   0x6   :  { %244 = vmatmul.msk.bf16.vlgmr.msra.gmra.mxu0 %vm40_vm1, %v34_v4  ;;  %132 = vmatpush.bf16.msra.mxu1 %v309_v5  ;;  %v311_v21 = vld [vmem:[%s439_s5] sm:$0xff]  ;;  %v316_v28 = vld [vmem:[%s442_s7 + $0x8] sm:$0xff] }
   0x7   :  { %v318_v22 = vld [vmem:[%s438_s4] ss:$0 sm:$0xff]  ;;  %231 = vmatpush.bf16.msra.mxu3 %v316_v28 }
   0x8   :  { %v315_v29 = vld [vmem:[%s442_s7] sm:$0xff] }
   0x9   :  { %191 = vmatpush.bf16.msra.mxu2 %v313_v13  ;;  %v319_v30 = vld [vmem:[%s440_s6] ss:$0 sm:$0xff] }
   0xa   :  { %133 = vmatpush.bf16.msra.mxu1 %v308_v6  ;;  %v320_v36 = vld [vmem:[%s441_s8] ss:$0 sm:$0xff] }
   0xb   :  { %232 = vmatpush.bf16.msra.mxu3 %v315_v29 }
   0xd   :  { %192 = vmatpush.bf16.msra.mxu2 %v312_v20 }
   0xe   :  { %134 = vmatpush.bf16.msra.mxu1 %v307_v7 }
  0x11   :  { %193 = vmatpush.bf16.msra.mxu2 %v311_v21 }
  0x12   :  { %135 = vmatpush.bf16.msra.mxu1 %v306_v8 }
  0x16   :  { %136 = vmatpush.bf16.msra.mxu1 %v305_v9 }
  0x1a   :  { %137 = vmatpush.bf16.msra.mxu1 %v304_v10 }
  0x1e   :  { %138 = vmatpush.bf16.msra.mxu1 %v303_v11 }
  0x83   :  { %v57_v15 = vpop.f32.mrf.mxu0 }
  0x84   :  { %v58_v16 = vadd.f32 %v317_v14, %v57_v15 }
  0x86   :  { %v61_v17 = vmax.f32 %v58_v16, 0.0 }
  0x88   :  { %v62_v18 = vpack.c.bf16 %v61_v17, %v61_v17 }
  0x8a   :  { %139 = vmatmul.bf16.vlgmr.msra.gmra.mxu1 %v62_v18 }
  0x8b   :  { %v59_v19 = vpop.f32.mrf.mxu0 }
 0x107   :  { %v140_v23 = vpop.f32.mrf.mxu1 }
 0x108   :  { %v141_v24 = vadd.f32 %v318_v22, %v140_v23 }
 0x10a   :  { %v144_v25 = vmax.f32 %v141_v24, 0.0 }
 0x10c   :  { %v145_v26 = vpack.c.bf16 %v144_v25, %v144_v25 }
 0x10e   :  { %293 = vmatmul.msk.bf16.vlgmr.msra.gmra.mxu2 %vm182_vm2, %v145_v26 }
 0x10f   :  { %v142_v27 = vpop.f32.mrf.mxu1 }
 0x191   :  { %v195_v31 = vpop.f32.mrf.mxu2 }
 0x192   :  { %v196_v32 = vadd.f32 %v319_v30, %v195_v31 }
 0x194   :  { %v199_v33 = vmax.f32 %v196_v32, 0.0 }
 0x196   :  { %v200_v34 = vpack.c.bf16 %v199_v33, %v199_v33 }
 0x198   :  { %302 = vmatmul.msk.bf16.vlgmr.msra.gmra.mxu3 %vm221_vm3, %v200_v34 }
 0x199   :  { %v197_v35 = vpop.f32.mrf.mxu2 }
 0x21b   :  { %v234_v37 = vpop.f32.mrf.mxu3 }
 0x21c   :  { %v235_v38 = vadd.f32 %v320_v36, %v234_v37 }
 0x21e   :  { %239 = vst.msk [vmem:[%s443_s9] sm:$0xff] %vm238_vm4, %v235_v38 }
 0x223   :  { %v236_v39 = vpop.f32.mrf.mxu3 }

</bundles_post_ra>
